<compile_context>
chip_gen: v7x
topology: tpu7x:2x2x1
jax: 0.10.0
libtpu: 0.0.40
codegen_flags: <defaults>
</compile_context>

<pallas_src>
import functools

import jax
import jax.numpy as jnp
from jax.experimental import pallas as pl
from jax.experimental.pallas import tpu as pltpu


def _round_up(x, m):
    return (x + m - 1) // m * m


def _vmem_limit_bytes():
    """Generation-aware scoped-VMEM limit: ~75% of physical capacity
    (~48 MiB on v7x's 64 MiB, ~96 MiB on v5e/v6e's 128 MiB)."""
    cap = 128 * 1024 * 1024
    try:
        info = pltpu.get_tpu_info()
        cap = int(getattr(info, "vmem_capacity_bytes", cap) or cap)
    except Exception:
        pass
    return min(cap * 3 // 4, 112 * 1024 * 1024)


def _divisor_tiles(dim):
    """128-aligned divisors of a 128-aligned dim, ascending."""
    return [t for t in range(128, dim + 1, 128) if dim % t == 0]


def _pick_tile(dim, preferred=256):
    """Largest 128-aligned divisor of `dim` <= preferred.  All dims reaching
    here are padded to multiples of 128 by the wrapper, so this never falls
    back to a giant single block."""
    cands = [t for t in _divisor_tiles(dim) if t <= preferred]
    return max(cands) if cands else dim


# --------------------------------------------------------------------------- #
# Kernel 1: tiled (M, K) @ (K, N) matmul — the hoisted, batch-independent
# projection X_flat @ [W1 | W2].  f32 accumulation; optional bf16 MXU inputs.
# --------------------------------------------------------------------------- #
def _matmul_kernel(x_ref, w_ref, o_ref, acc_ref, *, compute_dtype):
    k = pl.program_id(2)

    @pl.when(k == 0)
    def _():
        acc_ref[...] = jnp.zeros_like(acc_ref)

    acc_ref[...] += jnp.dot(
        x_ref[...].astype(compute_dtype),
        w_ref[...].astype(compute_dtype),
        preferred_element_type=jnp.float32,
    )

    @pl.when(k == pl.num_programs(2) - 1)
    def _():
        o_ref[...] = acc_ref[...].astype(o_ref.dtype)


def _tiled_matmul(x, w, *, compute_dtype, out_dtype, vmem_limit):
    M, K = x.shape
    _, Nn = w.shape
    tm = _pick_tile(M, 256)
    tk = _pick_tile(K, 256)
    tn = _pick_tile(Nn, 256)
    # Keep >= 2 parallel grid slices for the v7x dual-TC megacore when possible.
    if (M // tm) * (Nn // tn) < 2 and M // 128 >= 2:
        tm = 128

    return pl.pallas_call(
        functools.partial(_matmul_kernel, compute_dtype=compute_dtype),
        out_shape=jax.ShapeDtypeStruct((M, Nn), out_dtype),
        grid_spec=pltpu.PrefetchScalarGridSpec(
            num_scalar_prefetch=0,
            grid=(M // tm, Nn // tn, K // tk),
            in_specs=[
                pl.BlockSpec((tm, tk), lambda i, j, k: (i, k)),
                pl.BlockSpec((tk, tn), lambda i, j, k: (k, j)),
            ],
            out_specs=pl.BlockSpec((tm, tn), lambda i, j, k: (i, j)),
            scratch_shapes=[pltpu.VMEM((tm, tn), jnp.float32)],
        ),
        compiler_params=pltpu.CompilerParams(
            dimension_semantics=("parallel", "parallel", "arbitrary"),
            vmem_limit_bytes=vmem_limit,
        ),
    )(x, w)


# --------------------------------------------------------------------------- #
# Kernel 2: out[b] = relu(Y[b] + A[b] @ Z[b] + bias).  A tiled over rows and
# the contraction axis; f32 VMEM accumulator; bias/Y/ReLU only in finalize.
# Z is either VMEM-resident per batch (sliced with pl.ds) or streamed per
# contraction step.
# --------------------------------------------------------------------------- #
def _agg_kernel(a_ref, z_ref, y_ref, b_ref, o_ref, acc_ref, *,
                compute_dtype, tk, z_resident):
    k = pl.program_id(2)

    @pl.when(k == 0)
    def _():
        acc_ref[...] = jnp.zeros_like(acc_ref)

    if z_resident:
        start = pl.multiple_of(k * tk, 128)
        z = z_ref[pl.ds(start, tk), :]
    else:
        z = z_ref[...]

    acc_ref[...] += jnp.dot(
        a_ref[...].astype(compute_dtype),
        z.astype(compute_dtype),
        preferred_element_type=jnp.float32,
    )

    @pl.when(k == pl.num_programs(2) - 1)
    def _():
        out = acc_ref[...] + y_ref[...].astype(jnp.float32) + b_ref[...]
        o_ref[...] = jnp.maximum(out, 0.0).astype(o_ref.dtype)


def _agg_vmem_bytes(tn, tk, Np, Fp, a_bytes, z_bytes, out_bytes, z_resident):
    a_buf = 2 * tn * tk * a_bytes                            # A double buffer
    z_buf = 2 * (Np if z_resident else tk) * Fp * z_bytes    # Z buffers
    y_buf = 2 * tn * Fp * z_bytes                            # Y buffers
    b_buf = 2 * 8 * Fp * 4                                   # bias (padded)
    o_buf = 2 * tn * Fp * out_bytes                          # output buffers
    acc = tn * Fp * 4                                        # f32 accumulator
    return a_buf + z_buf + y_buf + b_buf + o_buf + acc


def _choose_agg_tiling(B, Np, Fp, *, a_bytes, z_bytes, out_bytes, vmem_limit):
    budget = int(vmem_limit * 0.7)
    divisors = _divisor_tiles(Np)
    tk = max(t for t in divisors if t <= 256)
    # Large output-row tiles amortize per-step overhead and cut Z re-reads,
    # but keep >= 2 parallel grid slices so both v7x TensorCores get work.
    tn_cands = sorted((t for t in divisors if t <= 1024), reverse=True)
    ordered = ([t for t in tn_cands if B * (Np // t) >= 2]
               + [t for t in tn_cands if B * (Np // t) < 2])
    # Prefer a VMEM-resident Z (fetched once per batch) over re-streaming it.
    for z_resident in (True, False):
        for tn in ordered:
            if _agg_vmem_bytes(tn, tk, Np, Fp, a_bytes, z_bytes, out_bytes,
                               z_resident) <= budget:
                return tn, tk, z_resident
    return min(divisors), tk, False


def _aggregate_combine(a, xw, bias_pad, Fp, *, compute_dtype, out_dtype,
                       tn, tk, z_resident, vmem_limit):
    B, Np, _ = a.shape

    if z_resident:
        # Block index constant across (i, k): Z fetched once per batch.
        z_spec = pl.BlockSpec((pl.Squeezed(), Np, Fp), lambda b, i, k: (b, 0, 1))
    else:
        z_spec = pl.BlockSpec((pl.Squeezed(), tk, Fp), lambda b, i, k: (b, k, 1))

    return pl.pallas_call(
        functools.partial(_agg_kernel, compute_dtype=compute_dtype,
                          tk=tk, z_resident=z_resident),
        out_shape=jax.ShapeDtypeStruct((B, Np, Fp), out_dtype),
        grid_spec=pltpu.PrefetchScalarGridSpec(
            num_scalar_prefetch=0,
            grid=(B, Np // tn, Np // tk),
            in_specs=[
                # A[b, i*tn:(i+1)*tn, k*tk:(k+1)*tk]  (read once, f32 from HBM)
                pl.BlockSpec((pl.Squeezed(), tn, tk), lambda b, i, k: (b, i, k)),
                # Z = xw[b, :, Fp:2*Fp] (resident) or xw[b, k-slice, Fp:2*Fp]
                z_spec,
                # Y = xw[b, i*tn:(i+1)*tn, 0:Fp]
                pl.BlockSpec((pl.Squeezed(), tn, Fp), lambda b, i, k: (b, i, 0)),
                # bias, replicated across the grid
                pl.BlockSpec((1, Fp), lambda b, i, k: (0, 0)),
            ],
            out_specs=pl.BlockSpec((pl.Squeezed(), tn, Fp),
                                   lambda b, i, k: (b, i, 0)),
            scratch_shapes=[pltpu.VMEM((tn, Fp), jnp.float32)],
        ),
        compiler_params=pltpu.CompilerParams(
            dimension_semantics=("parallel", "parallel", "arbitrary"),
            vmem_limit_bytes=vmem_limit,
        ),
    )(a, xw, xw, bias_pad)


def graph_conv(features, A, weight, bias, *, compute_dtype=jnp.bfloat16):
    """GraphConv forward.

    features: (B, N, D) f32, A: (B, N, N) row-normalized adjacency,
    weight: (2*D, F), bias: (F,).  Returns (B, N, F) in features.dtype.

    compute_dtype: MXU input dtype (jnp.bfloat16 or jnp.float32).  Accumulation
    is always f32; the exact f32 path keeps the Y/Z intermediate in f32.
    """
    # TODO(synk): the PyTorch module takes `agg` as a constructor argument; this
    # kernel implements the standard MeanAggregator (bmm(A, X) with A assumed
    # row-normalized upstream, i.e. A @ X is the neighbor mean).
    B, N, D = features.shape
    two_d, F = weight.shape
    assert two_d == 2 * D
    assert A.shape == (B, N, N)

    vmem_limit = _vmem_limit_bytes()

    # Pad all dims to multiples of 128: 128-aligned, lane-dense tiles on every
    # stream; zero rows/cols of A / X contribute nothing to the valid outputs.
    Np = _round_up(N, 128)
    Dp = _round_up(D, 128)
    Fp = _round_up(F, 128)

    x_p = features
    if (Np - N) or (Dp - D):
        x_p = jnp.pad(features, ((0, 0), (0, Np - N), (0, Dp - D)))
    a_p = A
    if Np - N:
        a_p = jnp.pad(A, ((0, 0), (0, Np - N), (0, Np - N)))
    # NOTE: A is intentionally NOT pre-cast here (the in-kernel cast suffices;
    # a wrapper cast would add a full extra HBM pass on the dominant stream).

    # Pack W1 (applied to X) and W2 (applied to aggregated features) side by
    # side so one flattened matmul yields both Y = X@W1 and Z = X@W2.
    w1 = jnp.pad(weight[:D], ((0, Dp - D), (0, Fp - F)))
    w2 = jnp.pad(weight[D:], ((0, Dp - D), (0, Fp - F)))
    w_packed = jnp.concatenate([w1, w2], axis=1)            # (Dp, 2*Fp)
    bias_pad = jnp.pad(bias, (0, Fp - F)).reshape(1, Fp)     # (1, Fp) f32

    # Y/Z intermediate dtype: bf16 on the fast path (halves kernel-1 writeback
    # and the Z/Y bytes re-read by kernel 2); f32 on the exact path.
    xw_dtype = jnp.float32 if compute_dtype == jnp.float32 else compute_dtype

    # Batch-independent projection over all B*Np rows at once.
    x_flat = x_p.reshape(B * Np, Dp)
    xw = _tiled_matmul(x_flat, w_packed, compute_dtype=compute_dtype,
                       out_dtype=xw_dtype, vmem_limit=vmem_limit)
    xw = xw.reshape(B, Np, 2 * Fp)       # [:, :, :Fp] = Y, [:, :, Fp:] = Z

    tn, tk, z_resident = _choose_agg_tiling(
        B, Np, Fp,
        a_bytes=jnp.dtype(a_p.dtype).itemsize,
        z_bytes=jnp.dtype(xw_dtype).itemsize,
        out_bytes=jnp.dtype(features.dtype).itemsize,
        vmem_limit=vmem_limit)

    out_padded = _aggregate_combine(
        a_p, xw, bias_pad, Fp,
        compute_dtype=compute_dtype, out_dtype=features.dtype,
        tn=tn, tk=tk, z_resident=z_resident, vmem_limit=vmem_limit)
    return out_padded[:, :N, :F]


def graph_conv_ref(features, A, weight, bias):
    agg = jnp.einsum('bij,bjd->bid', A, features)
    cat = jnp.concatenate([features, agg], axis=2)
    out = jnp.einsum('bnd,df->bnf', cat, weight) + bias
    return jnp.maximum(out, 0.0)


if __name__ == "__main__":
    key = jax.random.PRNGKey(0)
    B, N, D, Fout = 2, 16, 32, 32

    k_x, k_a, k_w = jax.random.split(key, 3)
    features = jax.random.normal(k_x, (B, N, D), dtype=jnp.float32)

    # Row-normalized adjacency (mean-aggregator contract: A @ X == neighbor mean).
    a_raw = jax.random.uniform(k_a, (B, N, N), dtype=jnp.float32)
    A = a_raw / jnp.sum(a_raw, axis=-1, keepdims=True)

    # Deterministic xavier_uniform-style weight (2*D, Fout), zero bias.
    fan_in, fan_out = 2 * D, Fout
    limit = jnp.sqrt(6.0 / (fan_in + fan_out))
    weight = jax.random.uniform(k_w, (2 * D, Fout), dtype=jnp.float32,
                                minval=-limit, maxval=limit)
    bias = jnp.zeros((Fout,), dtype=jnp.float32)

    ref = graph_conv_ref(features, A, weight, bias)

    # Exact path: f32 MXU inputs, f32 intermediates.
    out_f32 = jax.block_until_ready(
        graph_conv(features, A, weight, bias, compute_dtype=jnp.float32))
    assert out_f32.shape == (B, N, Fout)
    assert jnp.allclose(out_f32, ref, atol=1e-4, rtol=1e-4), "f32 mismatch vs reference"

    # Fast path: bf16 MXU inputs + bf16 Y/Z intermediate, f32 accumulation.
    out_bf16 = jax.block_until_ready(
        graph_conv(features, A, weight, bias, compute_dtype=jnp.bfloat16))
    assert out_bf16.shape == (B, N, Fout)
    assert jnp.allclose(out_bf16, ref, atol=5e-2, rtol=5e-2), "bf16 mismatch vs reference"

    print("KERNEL_OK")
</pallas_src>

<mosaic_0001>
module attributes {stable_mosaic.version = 11 : i64} {
  func.func @_matmul_kernel(%arg0: i32, %arg1: i32, %arg2: i32, %arg3: memref<128x128xf32, #tpu.memory_space<vmem>>, %arg4: memref<128x256xf32, #tpu.memory_space<vmem>>, %arg5: memref<128x256xf32, #tpu.memory_space<vmem>>, %arg6: memref<128x256xf32, #tpu.memory_space<vmem>>) attributes {dimension_semantics = [#tpu.dimension_semantics<parallel>, #tpu.dimension_semantics<parallel>, #tpu.dimension_semantics<arbitrary>], iteration_bounds = array<i64: 2, 1, 1>, scalar_prefetch = 0 : i64, scratch_operands = 1 : i64, tpu.core_type = #tpu.core_type<tc>, window_params = [{transform_indices = @transform_0, window_bounds = array<i64: 128, 128>}, {transform_indices = @transform_1, window_bounds = array<i64: 128, 256>}, {transform_indices = @transform_2, window_bounds = array<i64: 128, 256>}]} {
    %c0_i32 = arith.constant 0 : i32
    %0 = arith.cmpi eq, %arg2, %c0_i32 : i32
    %1 = arith.extui %0 : i1 to i32
    %c0_i32_0 = arith.constant 0 : i32
    %2 = arith.cmpi ne, %1, %c0_i32_0 : i32
    scf.if %2 {
      %cst_10 = arith.constant 0.000000e+00 : f32
      %12 = vector.broadcast %cst_10 : f32 to vector<128x256xf32>
      %c0_11 = arith.constant 0 : index
      %c0_12 = arith.constant 0 : index
      %13 = vector.load %arg6[%c0_11, %c0_12] : memref<128x256xf32, #tpu.memory_space<vmem>>, vector<128x256xf32>
      tpu.vector_store %arg6[%c0_11, %c0_12], %12 {strides = array<i32>} : memref<128x256xf32, #tpu.memory_space<vmem>>, vector<128x256xf32>,
    } else {
    }
    %c0 = arith.constant 0 : index
    %c0_1 = arith.constant 0 : index
    %3 = vector.load %arg6[%c0, %c0_1] : memref<128x256xf32, #tpu.memory_space<vmem>>, vector<128x256xf32>
    %c0_2 = arith.constant 0 : index
    %c0_3 = arith.constant 0 : index
    %4 = vector.load %arg3[%c0_2, %c0_3] : memref<128x128xf32, #tpu.memory_space<vmem>>, vector<128x128xf32>
    %c0_4 = arith.constant 0 : index
    %c0_5 = arith.constant 0 : index
    %5 = vector.load %arg4[%c0_4, %c0_5] : memref<128x256xf32, #tpu.memory_space<vmem>>, vector<128x256xf32>
    %cst = arith.constant dense<0.000000e+00> : vector<128x256xf32>
    %6 = tpu.matmul %4, %5, %cst {dimension_numbers = #tpu.dot_dimension_numbers<[1], [0], [0], [1], [0, 0, 1, 1], [], []>} : vector<128x128xf32>, vector<128x256xf32>, vector<128x256xf32> -> vector<128x256xf32>
    %7 = arith.addf %3, %6 : vector<128x256xf32>
    %c0_6 = arith.constant 0 : index
    %c0_7 = arith.constant 0 : index
    %8 = vector.load %arg6[%c0_6, %c0_7] : memref<128x256xf32, #tpu.memory_space<vmem>>, vector<128x256xf32>
    tpu.vector_store %arg6[%c0_6, %c0_7], %7 {strides = array<i32>} : memref<128x256xf32, #tpu.memory_space<vmem>>, vector<128x256xf32>,
    %c0_i32_8 = arith.constant 0 : i32
    %9 = arith.cmpi eq, %arg2, %c0_i32_8 : i32
    %10 = arith.extui %9 : i1 to i32
    %c0_i32_9 = arith.constant 0 : i32
    %11 = arith.cmpi ne, %10, %c0_i32_9 : i32
    scf.if %11 {
      %c0_10 = arith.constant 0 : index
      %c0_11 = arith.constant 0 : index
      %12 = vector.load %arg6[%c0_10, %c0_11] : memref<128x256xf32, #tpu.memory_space<vmem>>, vector<128x256xf32>
      %c0_12 = arith.constant 0 : index
      %c0_13 = arith.constant 0 : index
      %13 = vector.load %arg5[%c0_12, %c0_13] : memref<128x256xf32, #tpu.memory_space<vmem>>, vector<128x256xf32>
      tpu.vector_store %arg5[%c0_12, %c0_13], %12 {strides = array<i32>} : memref<128x256xf32, #tpu.memory_space<vmem>>, vector<128x256xf32>,
    } else {
    }
    return
  }
  func.func @transform_0(%arg0: i32, %arg1: i32, %arg2: i32) -> (i32, i32) {
    %c0_i32 = arith.constant 0 : i32
    return %arg0, %arg2 : i32, i32
  }
  func.func @transform_1(%arg0: i32, %arg1: i32, %arg2: i32) -> (i32, i32) {
    %c0_i32 = arith.constant 0 : i32
    return %arg2, %arg1 : i32, i32
  }
  func.func @transform_2(%arg0: i32, %arg1: i32, %arg2: i32) -> (i32, i32) {
    %c0_i32 = arith.constant 0 : i32
    return %arg0, %arg1 : i32, i32
  }
}

</mosaic_0001>

<bundles_post_ra>
// kernel: tpu_custom_call.1
= control target key start
LH: loop header
LB: loop body
LE: loop exit
PB: predicated region body
PF: predicated region fallthrough
CT: control target
= control target key end

     0   :  { %7 = vsyncpa [#allocation4], 0  ;;  %s1357_s0 = inlined_call_operand.hbm [shape: f32[256,128], index: 0, kind: input, shape index: {}]   ;;  %s1358_s1 = inlined_call_operand.hbm [shape: f32[128,256], index: 1, kind: input, shape index: {}]   ;;  %s1359_s2 = inlined_call_operand.hbm [shape: f32[256,256], index: 2, kind: output, shape index: {}]  }
   0x1   :  { %9 = vsyncpa [#allocation4 + $0x1], 0 }
   0x2   :  { %10 = vsyncpa [#allocation7], 0 }
   0x3   :  { %11 = vsyncpa [#allocation5], 0 }
   0x4   :  { %13 = vsyncpa [#allocation5 + $0x1], 0  ;;  %s1068_s9 = smov 0   ;;  %s1070_s10 = smov 0  }
   0x5   :  { %s1072_s11 = smov 0   ;;  %s1074_s12 = smov 0  }
   0x6   :  { %s1076_s13 = smov 0   ;;  %s1078_s14 = smov 0  }
   0x7 LB: > { %s748_s15 = sadd.s32 4294967295, %s1041_s14   ;;  %s749_s16 = sadd.s32 4294967294, %s1041_s14   ;;  %s1041_s14 = sphi %s1078_s14, %s19_s14   ;;  %s1037_s13 = sphi %s1076_s13, %s1383_s13   ;;  %s1033_s12 = sphi %s1074_s12, %s1382_s12   ;;  %s1029_s11 = sphi %s1072_s11, %s1381_s11   ;;  %s1025_s10 = sphi %s1070_s10, %s1380_s10   ;;  %s1021_s9 = sphi %s1068_s9, %s1379_s9  }
   0x8   : > { %p60_p0 = scmp.ne.s32.totalorder %s1025_s10, %s1021_s9  ;;  %p1102_p1 = scmp.eq.s32.totalorder %s748_s15, 0 }
   0x9   : > { %p1106_p2 = scmp.eq.s32.totalorder %s748_s15, 1  ;;  %p120_p3 = scmp.eq.s32.totalorder %s749_s16, 1 }
   0xa   : > { %s1364_s17 = scalar_select %p1102_p1, 1, 0 }
   0xb   : > { %s1365_s18 = scalar_select %p1106_p2, 1, 0 }
   0xc   : > { %p1112_p4 = por %p1102_p1, %p60_p0  ;;  %p750_p5 = scmp.ge.s32.totalorder %s1041_s14, 1 }
   0xd   : > { %p1117_p6 = por %p120_p3, %p60_p0  ;;  %p127_p7 = scmp.lt.s32.totalorder %s1041_s14, 3 }
   0xe   : > { %s1366_s19 = scalar_select %p1112_p4, 1, 0 }
   0xf   : > { %s1367_s20 = scalar_select %p1117_p6, 1, 0 }
  0x10   : > { %p1122_p8 = pnand %p750_p5, %p127_p7  ;;  %s1043_s22 = smov [#allocation6]  }
  0x11   : > { %s145_s23 = sshll.u32 %s1043_s22, 4  ;;  %s38_s25 = sadd.s32 1, %s1037_s13  ;;  %s146_s23 = int_to_ptr.vmem [resolvable:$true] %s145_s23 }
  0x12   : > { %s1368_s21 = scalar_select %p1122_p8, 1, 0 }
  0x13   : > { %p825_p9 = pneg %p1122_p8  ;;  %s897_s28 = scalar_lea.hbm %s1358_s1, 4096 }
  0x14   : > { %p898_p12 = scmp.ne.s32.totalorder %s1358_s1, %s897_s28  ;;  %p904_p5 = scmp.lt.u32.totalorder %s897_s28, %s1358_s1 }
  0x15   : > { %p1131_p11 = pnand %p825_p9, %p1102_p1 }
  0x17   : > { %p899_p13 = pneg %p1131_p11 }
  0x19   : > { %p900_p0 = pnand %p899_p13, %p898_p12 }
  0x1b   : > { %p901_p3 = pneg %p900_p0 }
  0x1d   : > { %p906_p7 = pnand %p904_p5, %p901_p3 }
  0x1f   : > { %909 = shalt.err (!%p906_p7)
}
  0x20   : > { %s910_s5 = scalar_lea.vmem %s146_s23, 4096  ;;  %p918_p1 = scmp.lt.s32.totalorder %s146_s23, %s146_s23 }
  0x21   : > { %p911_p9 = scmp.ne.s32.totalorder %s146_s23, %s910_s5  ;;  %p919_p4 = scmp.lt.s32.totalorder %s910_s5, %s910_s5 }
  0x23   : > { %p913_p10 = pnand %p911_p9, %p899_p13  ;;  %p920_p8 = por %p919_p4, %p918_p1 }
  0x25   : > { %p914_p6 = pneg %p913_p10 }
  0x27   : > { %p921_p2 = pnand %p920_p8, %p914_p6 }
  0x29   : > { %924 = shalt.err (!%p921_p2)
}
  0x2a   : > { %s1044_s6 = smov 256   ;;  %s1045_s7 = smov 16  }
  0x2b   : > { %828 = dma.hbm_to_vmem [thread:$0]  (!%p1131_p11), %s1358_s1, 4096, %s146_s23, [#allocation7], %s1044_s6, %s1044_s6, %s1045_s7  }
  0x2c   : > { %p40_p1 = scmp.ge.s32.totalorder %s38_s25, 2  ;;  %s47_s16 = sadd.s32 1, %s1029_s11 }
  0x2d   : > { %p54_p2 = scmp.ne.s32.totalorder %s1029_s11, %s1025_s10  ;;  %p55_p4 = scmp.eq.s32.totalorder %s1041_s14, 0 }
  0x2e   : > { %s1385_s25 = smov (%p40_p1, %s38_s25), 0  ;;  %p1371_p8 = scmp.ne.s32.totalorder %s1365_s18, 0 }
  0x2f   : > { %p1158_p6 = por %p55_p4, %p54_p2  ;;  %s42_s24 = ssub.s32 %s1037_s13, %s1385_s25 }
  0x30   : > { %p1164_p10 = por %p1371_p8, %p54_p2  ;;  %p838_p12 = scmp.lt.s32.totalorder %s1041_s14, 2 }
  0x31   : > { %p45_p11 = scmp.eq.s32.totalorder %s42_s24, 0  ;;  %s159_s23 = sand.u32 1, %s1029_s11  }
  0x32   : > { %s753_s27 = sshll.u32 %s159_s23, 7  ;;  %s766_s29 = sshll.u32 %s1037_s13, 11 }
  0x33   : > { %s1173_s28 = scalar_select %p45_p11, %s1029_s11, %s47_s16  }
  0x34   : > { %s1179_s4 = scalar_lea.hbm %s1357_s0, %s766_s29  ;;  %s163_s18 = scalar_lea.vmem [#allocation3], %s753_s27 }
  0x35   : > { %s171_s5 = sshll.u32 %s163_s18, 4  ;;  %p1185_p13 = pnand %p838_p12, %p1158_p6  ;;  %s1181_s5 = int_to_ptr.vmem [resolvable:$true] %s171_s5 }
  0x36   : > { %s1189_s7 = scalar_lea.sflag [#allocation4], %s159_s23  ;;  %s925_s8 = scalar_lea.hbm %s1179_s4, 2048 }
  0x37   : > { %p926_p0 = scmp.ne.s32.totalorder %s1179_s4, %s925_s8  ;;  %p927_p3 = pneg %p1185_p13 }
  0x38   : > { %s930_s22 = scalar_lea.hbm %s1357_s0, 4096  ;;  %p931_p9 = scmp.lt.u32.totalorder %s1179_s4, %s1357_s0 }
  0x39   : > { %p928_p5 = pnand %p927_p3, %p926_p0  ;;  %p932_p1 = scmp.lt.u32.totalorder %s930_s22, %s925_s8 }
  0x3a   : > { %p934_p4 = scmp.lt.u32.totalorder %s925_s8, %s1179_s4 }
  0x3b   : > { %p929_p7 = pneg %p928_p5  ;;  %p933_p2 = por %p932_p1, %p931_p9 }
  0x3d   : > { %p935_p6 = por %p934_p4, %p933_p2 }
  0x3f   : > { %p936_p8 = pnand %p935_p6, %p929_p7 }
  0x41   : > { %939 = shalt.err (!%p936_p8)
}
  0x42   : > { %s940_s23 = scalar_lea.vmem %s1181_s5, 2048  ;;  %s1046_s29 = smov [#allocation3]  }
  0x43   : > { %p941_p12 = scmp.ne.s32.totalorder %s1181_s5, %s940_s23  ;;  %s945_s30 = sshll.u32 %s1046_s29, 4  ;;  %s946_s30 = int_to_ptr.vmem [resolvable:$false] %s945_s30 }
  0x44   : > { %s947_s3 = scalar_lea.vmem %s946_s30, 4096  ;;  %p948_p5 = scmp.lt.s32.totalorder %s1181_s5, %s946_s30 }
  0x45   : > { %p943_p11 = pnand %p941_p12, %p927_p3  ;;  %p949_p9 = scmp.lt.s32.totalorder %s947_s3, %s940_s23 }
  0x47   : > { %p944_p0 = pneg %p943_p11  ;;  %p950_p1 = por %p949_p9, %p948_p5 }
  0x49   : > { %p951_p2 = pnand %p950_p1, %p944_p0 }
  0x4b   : > { %954 = shalt.err (!%p951_p2)
}
  0x4c   : > { %s1047_s18 = smov 128   ;;  %s1048_s8 = smov 8  }
  0x4d   : > { %832 = dma.hbm_to_vmem [thread:$0]  (!%p1185_p13), %s1179_s4, 2048, %s1181_s5, %s1189_s7, %s1047_s18, %s1047_s18, %s1048_s8  }
  0x4e   : > { %p1374_p3 = scmp.ne.s32.totalorder %s1368_s21, 0 }
  0x4f   : > { %s1220_s15 = sand.u32 (!%p1374_p3), 1, %s1025_s10   ;;  %p1375_p7 = scmp.ne.s32.totalorder (!%p1374_p3), %s1366_s19, 0 }
  0x50   : > { %183 = sbr.rel (%p1374_p3) target bundleno = 382 (0x17e), region = 28  ;;  %s757_s16 = sshll.u32 (!%p1374_p3), %s1220_s15, 7 }
  0x51   : > { %s186_s22 = scalar_lea.sflag (!%p1374_p3), [#allocation4], %s1220_s15  ;;  %s1224_s24 = scalar_lea.vmem (!%p1374_p3), [#allocation3], %s757_s16 }
  0x57   : > { %1008 = dma.done.wait (%p1375_p7), %s186_s22, 2048  }
  0x58   : > { %1010 = vsyncadd (%p1375_p7), %s186_s22, 4294965248  ;;  %p1376_p13 = scmp.ne.s32.totalorder %s1364_s17, 0 }
  0x5a   : > { %1012 = dma.done.wait (%p1376_p13), [#allocation7], 4096  }
  0x5b   : > { %1014 = vsyncadd (%p1376_p13), [#allocation7], 4294963200  ;;  %v1049_v0 = vmov 0.0   ;;  %v304_v1 = vld [vmem:[#allocation6 + $0x8] sm:$0xff]  ;;  %v306_v2 = vld [vmem:[#allocation6 + $0x18] sm:$0xff]  ;;  %s759_s17 = sshll.u32 %s1220_s15, 8 }
  0x5c   : > { %399 = vmatprep.mubr.f32.mxu0 %v1049_v0  ;;  %447 = vmatprep.mubr.f32.mxu1 %v1049_v0  ;;  %v303_v3 = vld [vmem:[#allocation6] sm:$0xff]  ;;  %v769_v4 = vpack.c.bf16 %v306_v2, %v304_v1  ;;  %v305_v5 = vld [vmem:[#allocation6 + $0x10] sm:$0xff]  ;;  %v308_v6 = vld [vmem:[#allocation6 + $0x28] sm:$0xff]  ;;  %s1267_s19 = scalar_lea.vmem [#allocation8], %s759_s17  ;;  %s768_s21 = sshll.u32 %s1033_s12, 12 }
  0x5d   : > { %v310_v7 = vld [vmem:[#allocation6 + $0x38] sm:$0xff]  ;;  %v771_v8 = vpack.c.bf16 %v305_v5, %v303_v3  ;;  %v307_v10 = vld [vmem:[#allocation6 + $0x20] sm:$0xff]  ;;  %v309_v11 = vld [vmem:[#allocation6 + $0x30] sm:$0xff]  ;;  %s644_s4 = sshll.u32 %s1267_s19, 4  ;;  %s1302_s7 = scalar_lea.hbm %s1359_s2, %s768_s21  ;;  %s1304_s4 = int_to_ptr.vmem [resolvable:$true] %s644_s4 }
  0x5e   : > { %v773_v9 = vpack.c.bf16 %v310_v7, %v308_v6  ;;  %v312_v12 = vld [vmem:[#allocation6 + $0x48] sm:$0xff]  ;;  %770 = vmatprep.subr.bf16.mxu0 %v769_v4  ;;  %801 = vmatprep.subr.bf16.mxu1 %v769_v4  ;;  %v314_v13 = vld [vmem:[#allocation6 + $0x58] sm:$0xff]  ;;  %v775_v14 = vpack.c.bf16 %v309_v11, %v307_v10  ;;  %v311_v16 = vld [vmem:[#allocation6 + $0x40] sm:$0xff]  ;;  %s628_s12 = scalar_lea.sflag [#allocation5], %s1220_s15  ;;  %s955_s27 = scalar_lea.vmem %s1304_s4, 4096 }
  0x5f   : > { %772 = vmatpush1.bf16.msra.mxu0 %v771_v8  ;;  %809 = vmatpush1.bf16.msra.mxu1 %v771_v8  ;;  %v777_v15 = vpack.c.bf16 %v314_v13, %v312_v12  ;;  %v313_v17 = vld [vmem:[#allocation6 + $0x50] sm:$0xff]  ;;  %v316_v18 = vld [vmem:[#allocation6 + $0x68] sm:$0xff]  ;;  %v318_v19 = vld [vmem:[#allocation6 + $0x78] sm:$0xff]  ;;  %p956_p4 = scmp.ne.s32.totalorder %s1304_s4, %s955_s27  ;;  %s1050_s23 = smov [#allocation8]  }
  0x60   : > { %774 = vmatprep.subr.bf16.mxu0 %v773_v9  ;;  %802 = vmatprep.subr.bf16.mxu1 %v773_v9  ;;  %v779_v20 = vpack.c.bf16 %v313_v17, %v311_v16  ;;  %v781_v21 = vpack.c.bf16 %v318_v19, %v316_v18  ;;  %v315_v22 = vld [vmem:[#allocation6 + $0x60] sm:$0xff]  ;;  %v317_v23 = vld [vmem:[#allocation6 + $0x70] sm:$0xff]  ;;  %v320_v24 = vld [vmem:[#allocation6 + $0x88] sm:$0xff]  ;;  %s959_s29 = sshll.u32 %s1050_s23, 4  ;;  %s960_s29 = int_to_ptr.vmem [resolvable:$false] %s959_s29 }
  0x61   : > { %v322_v25 = vld [vmem:[#allocation6 + $0x98] sm:$0xff]  ;;  %v783_v26 = vpack.c.bf16 %v317_v23, %v315_v22  ;;  %v319_v28 = vld [vmem:[#allocation6 + $0x80] sm:$0xff]  ;;  %v321_v29 = vld [vmem:[#allocation6 + $0x90] sm:$0xff]  ;;  %p957_p6 = pnand %p956_p4, %p1164_p10  ;;  %s961_s30 = scalar_lea.vmem %s960_s29, 8192 }
  0x62   : > { %v785_v27 = vpack.c.bf16 %v322_v25, %v320_v24  ;;  %v324_v30 = vld [vmem:[#allocation6 + $0xa8] sm:$0xff]  ;;  %v326_v31 = vld [vmem:[#allocation6 + $0xb8] sm:$0xff]  ;;  %v787_v32 = vpack.c.bf16 %v321_v29, %v319_v28  ;;  %v323_v34 = vld [vmem:[#allocation6 + $0xa0] sm:$0xff]  ;;  %p962_p12 = scmp.lt.s32.totalorder %s1304_s4, %s960_s29  ;;  %p963_p11 = scmp.lt.s32.totalorder %s961_s30, %s955_s27 }
  0x63   : > { %776 = vmatpush1.bf16.msra.mxu0 %v775_v14  ;;  %810 = vmatpush1.bf16.msra.mxu1 %v775_v14  ;;  %v789_v33 = vpack.c.bf16 %v326_v31, %v324_v30  ;;  %v325_v35 = vld [vmem:[#allocation6 + $0xb0] sm:$0xff]  ;;  %v328_v36 = vld [vmem:[#allocation6 + $0xc8] sm:$0xff]  ;;  %v330_v37 = vld [vmem:[#allocation6 + $0xd8] sm:$0xff]  ;;  %p958_p8 = pneg %p957_p6 }
  0x64   : > { %778 = vmatprep.subr.bf16.mxu0 %v777_v15  ;;  %803 = vmatprep.subr.bf16.mxu1 %v777_v15  ;;  %v791_v38 = vpack.c.bf16 %v325_v35, %v323_v34  ;;  %v793_v39 = vpack.c.bf16 %v330_v37, %v328_v36  ;;  %v327_v40 = vld [vmem:[#allocation6 + $0xc0] sm:$0xff]  ;;  %v329_v41 = vld [vmem:[#allocation6 + $0xd0] sm:$0xff]  ;;  %v332_v42 = vld [vmem:[#allocation6 + $0xe8] sm:$0xff]  ;;  %p964_p0 = por %p963_p11, %p962_p12 }
  0x65   : > { %v334_v43 = vld [vmem:[#allocation6 + $0xf8] sm:$0xff]  ;;  %v795_v44 = vpack.c.bf16 %v329_v41, %v327_v40  ;;  %v331_v46 = vld [vmem:[#allocation6 + $0xe0] sm:$0xff]  ;;  %v333_v47 = vld [vmem:[#allocation6 + $0xf0] sm:$0xff] }
  0x66   : > { %v797_v45 = vpack.c.bf16 %v334_v43, %v332_v42  ;;  %v799_v48 = vpack.c.bf16 %v333_v47, %v331_v46  ;;  %v287_v49 = vld [vmem:[%s1224_s24] sm:$0xff]  ;;  %v288_v51 = vld [vmem:[%s1224_s24 + $0x8] sm:$0xff]  ;;  %v289_v53 = vld [vmem:[%s1224_s24 + $0x10] sm:$0xff]  ;;  %p965_p5 = pnand %p964_p0, %p958_p8 }
  0x67   : > { %780 = vmatpush1.bf16.msra.mxu0 %v779_v20  ;;  %811 = vmatpush1.bf16.msra.mxu1 %v779_v20  ;;  %v295_v50 = vld [vmem:[%s1224_s24 + $0x40] sm:$0xff]  ;;  %v296_v52 = vld [vmem:[%s1224_s24 + $0x48] sm:$0xff]  ;;  %v297_v54 = vld [vmem:[%s1224_s24 + $0x50] sm:$0xff] }
  0x68   : > { %782 = vmatprep.subr.bf16.mxu0 %v781_v21  ;;  %804 = vmatprep.subr.bf16.mxu1 %v781_v21  ;;  %v290_v55 = vld [vmem:[%s1224_s24 + $0x18] sm:$0xff]  ;;  %v291_v57 = vld [vmem:[%s1224_s24 + $0x20] sm:$0xff]  ;;  %v292_v59 = vld [vmem:[%s1224_s24 + $0x28] sm:$0xff] }
  0x69   : > { %v298_v56 = vld [vmem:[%s1224_s24 + $0x58] sm:$0xff]  ;;  %v299_v58 = vld [vmem:[%s1224_s24 + $0x60] sm:$0xff]  ;;  %v300_v60 = vld [vmem:[%s1224_s24 + $0x68] sm:$0xff] }
  0x6a   : > { %v293_v61 = vld [vmem:[%s1224_s24 + $0x30] sm:$0xff]  ;;  %v294_v63 = vld [vmem:[%s1224_s24 + $0x38] sm:$0xff] }
  0x6b   : > { %784 = vmatpush1.bf16.msra.mxu0 %v783_v26  ;;  %812 = vmatpush1.bf16.msra.mxu1 %v783_v26  ;;  %v301_v62 = vld [vmem:[%s1224_s24 + $0x70] sm:$0xff]  ;;  %v302_v1 = vld [vmem:[%s1224_s24 + $0x78] sm:$0xff] }
  0x6c   : > { %786 = vmatprep.subr.bf16.mxu0 %v785_v27  ;;  %805 = vmatprep.subr.bf16.mxu1 %v785_v27 }
  0x6f   : > { %788 = vmatpush1.bf16.msra.mxu0 %v787_v32  ;;  %813 = vmatpush1.bf16.msra.mxu1 %v787_v32 }
  0x70   : > { %790 = vmatprep.subr.bf16.mxu0 %v789_v33  ;;  %806 = vmatprep.subr.bf16.mxu1 %v789_v33 }
  0x73   : > { %792 = vmatpush1.bf16.msra.mxu0 %v791_v38  ;;  %814 = vmatpush1.bf16.msra.mxu1 %v791_v38 }
  0x74   : > { %794 = vmatprep.subr.bf16.mxu0 %v793_v39  ;;  %807 = vmatprep.subr.bf16.mxu1 %v793_v39 }
  0x77   : > { %796 = vmatpush1.bf16.msra.mxu0 %v795_v44  ;;  %815 = vmatpush1.bf16.msra.mxu1 %v795_v44 }
  0x78   : > { %798 = vmatprep.subr.bf16.mxu0 %v797_v45  ;;  %808 = vmatprep.subr.bf16.mxu1 %v797_v45 }
  0x7b   : > { %800 = vmatpush1.bf16.msra.mxu0 %v799_v48  ;;  %816 = vmatpush1.bf16.msra.mxu1 %v799_v48 }
  0x7e   : > { %400 = vmatmul.mubr.f32.vlgmr.msra.gmra.mrb[0].mxu0 %v287_v49  ;;  %448 = vmatmul.mubr.f32.vlgmr.msra.gmra.mrb[0].mxu1 %v295_v50 }
  0x7f   : > { %405 = vmatprep.mubr.f32.mxu0 %v1049_v0  ;;  %453 = vmatprep.mubr.f32.mxu1 %v1049_v0 }
  0x82   : > { %406 = vmatmul.mubr.f32.gmra.mrb[2].mxu0 %v288_v51  ;;  %454 = vmatmul.mubr.f32.gmra.mrb[2].mxu1 %v296_v52 }
  0x83   : > { %411 = vmatprep.mubr.f32.mxu0 %v1049_v0  ;;  %459 = vmatprep.mubr.f32.mxu1 %v1049_v0 }
  0x86   : > { %412 = vmatmul.mubr.f32.gmra.mrb[4].mxu0 %v289_v53  ;;  %460 = vmatmul.mubr.f32.gmra.mrb[4].mxu1 %v297_v54 }
  0x87   : > { %417 = vmatprep.mubr.f32.mxu0 %v1049_v0  ;;  %465 = vmatprep.mubr.f32.mxu1 %v1049_v0 }
  0x8a   : > { %418 = vmatmul.mubr.f32.gmra.mrb[6].mxu0 %v290_v55  ;;  %466 = vmatmul.mubr.f32.gmra.mrb[6].mxu1 %v298_v56 }
  0x8b   : > { %423 = vmatprep.mubr.f32.mxu0 %v1049_v0  ;;  %471 = vmatprep.mubr.f32.mxu1 %v1049_v0 }
  0x8e   : > { %424 = vmatmul.mubr.f32.gmra.mrb[8].mxu0 %v291_v57  ;;  %472 = vmatmul.mubr.f32.gmra.mrb[8].mxu1 %v299_v58 }
  0x8f   : > { %429 = vmatprep.mubr.f32.mxu0 %v1049_v0  ;;  %477 = vmatprep.mubr.f32.mxu1 %v1049_v0 }
  0x92   : > { %430 = vmatmul.mubr.f32.gmra.mrb[10].mxu0 %v292_v59  ;;  %478 = vmatmul.mubr.f32.gmra.mrb[10].mxu1 %v300_v60 }
  0x93   : > { %435 = vmatprep.mubr.f32.mxu0 %v1049_v0  ;;  %483 = vmatprep.mubr.f32.mxu1 %v1049_v0 }
  0x96   : > { %436 = vmatmul.mubr.f32.gmra.mrb[12].mxu0 %v293_v61  ;;  %484 = vmatmul.mubr.f32.gmra.mrb[12].mxu1 %v301_v62 }
  0x97   : > { %441 = vmatprep.mubr.f32.mxu0 %v1049_v0  ;;  %489 = vmatprep.mubr.f32.mxu1 %v1049_v0 }
  0x9a   : > { %442 = vmatmul.mubr.f32.gmra.mrb[14].mxu0 %v294_v63  ;;  %490 = vmatmul.mubr.f32.gmra.mrb[14].mxu1 %v302_v1 }
 0x151   : > { %v401_v2 = vpop.f32.mrb[0].mxu0  ;;  %v449_v3 = vpop.f32.mrb[0].mxu1 }
 0x152   : > { %595 = vst [vmem:[%s1267_s19] sm:$0xff] %v401_v2  ;;  %611 = vst [vmem:[%s1267_s19 + $0x80] sm:$0xff] %v449_v3  ;;  %v403_v0 = vpop.f32.mrb[1].mxu0  ;;  %v451_v4 = vpop.f32.mrb[1].mxu1 }
 0x153   : > { %596 = vst [vmem:[%s1267_s19 + $0x8] sm:$0xff] %v403_v0  ;;  %612 = vst [vmem:[%s1267_s19 + $0x88] sm:$0xff] %v451_v4 }
 0x155   : > { %v407_v5 = vpop.f32.mrb[2].mxu0  ;;  %v455_v6 = vpop.f32.mrb[2].mxu1 }
 0x156   : > { %597 = vst [vmem:[%s1267_s19 + $0x10] sm:$0xff] %v407_v5  ;;  %613 = vst [vmem:[%s1267_s19 + $0x90] sm:$0xff] %v455_v6  ;;  %v409_v7 = vpop.f32.mrb[3].mxu0  ;;  %v457_v8 = vpop.f32.mrb[3].mxu1 }
 0x157   : > { %598 = vst [vmem:[%s1267_s19 + $0x18] sm:$0xff] %v409_v7  ;;  %614 = vst [vmem:[%s1267_s19 + $0x98] sm:$0xff] %v457_v8 }
 0x159   : > { %v413_v9 = vpop.f32.mrb[4].mxu0  ;;  %v461_v10 = vpop.f32.mrb[4].mxu1 }
 0x15a   : > { %599 = vst [vmem:[%s1267_s19 + $0x20] sm:$0xff] %v413_v9  ;;  %615 = vst [vmem:[%s1267_s19 + $0xa0] sm:$0xff] %v461_v10  ;;  %v415_v11 = vpop.f32.mrb[5].mxu0  ;;  %v463_v12 = vpop.f32.mrb[5].mxu1 }
 0x15b   : > { %600 = vst [vmem:[%s1267_s19 + $0x28] sm:$0xff] %v415_v11  ;;  %616 = vst [vmem:[%s1267_s19 + $0xa8] sm:$0xff] %v463_v12 }
 0x15d   : > { %v419_v13 = vpop.f32.mrb[6].mxu0  ;;  %v467_v14 = vpop.f32.mrb[6].mxu1 }
 0x15e   : > { %601 = vst [vmem:[%s1267_s19 + $0x30] sm:$0xff] %v419_v13  ;;  %617 = vst [vmem:[%s1267_s19 + $0xb0] sm:$0xff] %v467_v14  ;;  %v421_v15 = vpop.f32.mrb[7].mxu0  ;;  %v469_v16 = vpop.f32.mrb[7].mxu1 }
 0x15f   : > { %602 = vst [vmem:[%s1267_s19 + $0x38] sm:$0xff] %v421_v15  ;;  %618 = vst [vmem:[%s1267_s19 + $0xb8] sm:$0xff] %v469_v16 }
 0x161   : > { %v425_v17 = vpop.f32.mrb[8].mxu0  ;;  %v473_v18 = vpop.f32.mrb[8].mxu1 }
 0x162   : > { %603 = vst [vmem:[%s1267_s19 + $0x40] sm:$0xff] %v425_v17  ;;  %619 = vst [vmem:[%s1267_s19 + $0xc0] sm:$0xff] %v473_v18  ;;  %v427_v19 = vpop.f32.mrb[9].mxu0  ;;  %v475_v20 = vpop.f32.mrb[9].mxu1 }
 0x163   : > { %604 = vst [vmem:[%s1267_s19 + $0x48] sm:$0xff] %v427_v19  ;;  %620 = vst [vmem:[%s1267_s19 + $0xc8] sm:$0xff] %v475_v20 }
 0x165   : > { %v431_v21 = vpop.f32.mrb[10].mxu0  ;;  %v479_v22 = vpop.f32.mrb[10].mxu1 }
 0x166   : > { %605 = vst [vmem:[%s1267_s19 + $0x50] sm:$0xff] %v431_v21  ;;  %621 = vst [vmem:[%s1267_s19 + $0xd0] sm:$0xff] %v479_v22  ;;  %v433_v23 = vpop.f32.mrb[11].mxu0  ;;  %v481_v24 = vpop.f32.mrb[11].mxu1 }
 0x167   : > { %606 = vst [vmem:[%s1267_s19 + $0x58] sm:$0xff] %v433_v23  ;;  %622 = vst [vmem:[%s1267_s19 + $0xd8] sm:$0xff] %v481_v24 }
 0x169   : > { %v437_v25 = vpop.f32.mrb[12].mxu0  ;;  %v485_v26 = vpop.f32.mrb[12].mxu1 }
 0x16a   : > { %607 = vst [vmem:[%s1267_s19 + $0x60] sm:$0xff] %v437_v25  ;;  %623 = vst [vmem:[%s1267_s19 + $0xe0] sm:$0xff] %v485_v26  ;;  %v439_v27 = vpop.f32.mrb[13].mxu0  ;;  %v487_v28 = vpop.f32.mrb[13].mxu1 }
 0x16b   : > { %608 = vst [vmem:[%s1267_s19 + $0x68] sm:$0xff] %v439_v27  ;;  %624 = vst [vmem:[%s1267_s19 + $0xe8] sm:$0xff] %v487_v28 }
 0x16d   : > { %v443_v29 = vpop.f32.mrb[14].mxu0  ;;  %v491_v30 = vpop.f32.mrb[14].mxu1 }
 0x16e   : > { %609 = vst [vmem:[%s1267_s19 + $0x70] sm:$0xff] %v443_v29  ;;  %625 = vst [vmem:[%s1267_s19 + $0xf0] sm:$0xff] %v491_v30  ;;  %v445_v31 = vpop.f32.mrb[15].mxu0  ;;  %v493_v32 = vpop.f32.mrb[15].mxu1 }
 0x16f   : > { %610 = vst [vmem:[%s1267_s19 + $0x78] sm:$0xff] %v445_v31  ;;  %626 = vst [vmem:[%s1267_s19 + $0xf8] sm:$0xff] %v493_v32 }
 0x170   : > { %968 = shalt.err (!%p965_p5)
}
 0x171   : > { %s969_s3 = scalar_lea.hbm %s1302_s7, 4096  ;;  %s973_s16 = scalar_lea.hbm %s1359_s2, 8192 }
 0x172   : > { %p970_p9 = scmp.ne.s32.totalorder %s1302_s7, %s969_s3  ;;  %p974_p3 = scmp.lt.u32.totalorder %s1302_s7, %s1359_s2 }
 0x173   : > { %p975_p7 = scmp.lt.u32.totalorder %s973_s16, %s969_s3  ;;  %p977_p4 = scmp.lt.u32.totalorder %s969_s3, %s1302_s7 }
 0x174   : > { %p971_p1 = pnand %p970_p9, %p1164_p10 }
 0x175   : > { %p976_p13 = por %p975_p7, %p974_p3 }
 0x176   : > { %p972_p2 = pneg %p971_p1 }
 0x177   : > { %p978_p6 = por %p977_p4, %p976_p13 }
 0x179   : > { %p979_p8 = pnand %p978_p6, %p972_p2 }
 0x17b   : > { %982 = shalt.err (!%p979_p8)
}
 0x17c   : > { %s1051_s17 = smov 256   ;;  %s1052_s19 = smov 16  }
 0x17d   : > { %823 = dma.vmem_to_hbm [thread:$0]  (%p1164_p10), %s1304_s4, 4096, %s1302_s7, %s628_s12, %s1051_s17, %s1051_s17, %s1052_s19  }
 0x17e PF: > { %s659_s21 = sand.u32 1, %s1021_s9   ;;  %p1377_p12 = scmp.ne.s32.totalorder %s1367_s20, 0 }
 0x17f   : > { %p1378_p11 = scmp.ge.s32.totalorder %s1041_s14, 2  ;;  %s660_s5 = scalar_lea.sflag [#allocation5], %s659_s21 }
 0x181   : > { %p834_p0 = pnand %p1378_p11, %p1377_p12 }
 0x183   : > { %1016 = dma.done.wait (!%p834_p0), %s660_s5, 4096  }
 0x184   : > { %1018 = vsyncadd (!%p834_p0), %s660_s5, 4294963200  ;;  %s19_s14 = sadd.s32 1, %s1041_s14   ;;  %s1379_s9 = smov %s1025_s10 }
 0x185   : > { %p16_p5 = scmp.ge.s32.totalorder %s19_s14, 4   ;;  %s1380_s10 = smov %s1029_s11 }
 0x186   : > { %s1381_s11 = smov %s1173_s28  ;;  %s1382_s12 = smov %s1037_s13 }
 0x187   : > { %s1383_s13 = smov %s1385_s25  ;;  %18 = sbr.rel (!%p16_p5) target bundleno = 7 (0x7), region = 86 }
 0x18e   :  { %665 = vsyncpa [#allocation4], 1 }
 0x18f   :  { %667 = vsyncpa [#allocation4 + $0x1], 1 }
 0x190   :  { %668 = vsyncpa [#allocation7], 1 }
 0x191   :  { %669 = vsyncpa [#allocation5], 1 }
 0x192   :  { %671 = vsyncpa [#allocation5 + $0x1], 1 }

</bundles_post_ra>
